<compile_context>
chip_gen: v6e
topology: v6e:2x2x1
jax: 0.10.0
libtpu: 0.0.40
codegen_flags: <defaults>
</compile_context>

<pallas_src>
import functools

import jax
import jax.numpy as jnp
from jax.experimental import pallas as pl
from jax.experimental.pallas import tpu as pltpu


def _round_up(x, m):
    return (x + m - 1) // m * m


def _mlp_kernel(x_ref, w1_ref, b1_ref, w2_ref, b2_ref, o_ref):
    # fc1: X @ W1 (MXU, f32 accumulation) + b1 (f32), then ReLU.
    # X is cast to the weight compute dtype inside the kernel: no-op on the f32
    # path, and on the bf16 path it avoids a separate wrapper-side astype pass.
    x = x_ref[...].astype(w1_ref.dtype)
    h = jnp.dot(x, w1_ref[...], preferred_element_type=jnp.float32)
    h = jnp.maximum(h + b1_ref[...], 0.0)
    # fc2: hidden activations go to the MXU in the weight compute dtype,
    # accumulate in f32, add f32 bias, store in the output dtype.
    out = jnp.dot(h.astype(w2_ref.dtype), w2_ref[...],
                  preferred_element_type=jnp.float32)
    o_ref[...] = (out + b2_ref[...]).astype(o_ref.dtype)


def _vmem_limit_bytes(tm, n_in, n_hidden, n_out, x_dtype, w_dtype, out_dtype):
    xs = jnp.dtype(x_dtype).itemsize
    ws = jnp.dtype(w_dtype).itemsize
    os_ = jnp.dtype(out_dtype).itemsize
    stream = 2 * tm * n_in * xs + 2 * tm * n_out * os_        # double-buffered X / out
    resident = (n_in * n_hidden + n_hidden * n_out) * ws + (n_hidden + n_out) * 4
    interm = tm * n_hidden * 4 + tm * n_out * 4               # f32 intermediates
    total = stream + resident + interm
    # Generous headroom, but stay well under v7x's 64 MiB physical VMEM.
    return int(min(max(4 * total, 8 << 20), 32 << 20))


def prepare_params(w1, b1, w2, b2, *, compute_dtype=None):
    """One-time parameter prep (hoisted out of the per-call forward).

    Optionally casts the weights to the MXU compute dtype (e.g. bf16 on
    v6e/v7x); biases are kept f32 and reshaped to (1, n)."""
    cdt = w1.dtype if compute_dtype is None else compute_dtype
    return (w1.astype(cdt),
            jnp.asarray(b1, jnp.float32).reshape(1, -1),
            w2.astype(cdt),
            jnp.asarray(b2, jnp.float32).reshape(1, -1))


@functools.partial(jax.jit, static_argnames=("block_m",))
def logistic_regression_forward(x, w1, b1, w2, b2, *, block_m=1024):
    """x: (B, n_in), w1: (n_in, n_hidden), b1: (1, n_hidden),
       w2: (n_hidden, n_out), b2: (1, n_out) -> (B, n_out).

       Weights may be f32 or bf16 (see prepare_params); X stays in its own
       dtype on the wire and is cast to the weight dtype inside the kernel.
       block_m: batch tile size (rows per grid step); sweepable."""
    B, n_in = x.shape
    n_hidden = w1.shape[1]
    n_out = w2.shape[1]
    out_dtype = x.dtype

    # Biases as (1, n) f32 (no-op if prepare_params already did it).
    b1 = jnp.asarray(b1, jnp.float32).reshape(1, n_hidden)
    b2 = jnp.asarray(b2, jnp.float32).reshape(1, n_out)

    # Sublane-packing multiple for the X / output blocks, driven by X's dtype.
    itemsize = jnp.dtype(x.dtype).itemsize
    mult = {4: 8, 2: 16, 1: 32}.get(itemsize, 8)

    if B <= block_m:
        # Whole batch fits one tile.  On multi-TC chips (v7x) split into two
        # legal tiles so the 'parallel' batch axis can shard across both cores;
        # otherwise use a single full-extent block (always a legal tile shape).
        half = _round_up(-(-B // 2), mult)
        tm = half if (B >= 2 * mult and half < B) else B
    else:
        # Round a user-supplied block_m down to a legal multiple (>= mult).
        tm = max(mult, (min(block_m, B) // mult) * mult)

    grid = (pl.cdiv(B, tm),)   # ragged last tile handled by Pallas

    out = pl.pallas_call(
        _mlp_kernel,
        out_shape=jax.ShapeDtypeStruct((B, n_out), out_dtype),
        grid_spec=pltpu.PrefetchScalarGridSpec(
            num_scalar_prefetch=0,
            grid=grid,
            in_specs=[
                # X streams one batch tile per grid step (auto-pipelined).
                pl.BlockSpec((tm, n_in), lambda i: (i, 0)),
                # Weights / biases stay resident in VMEM across all steps.
                pl.BlockSpec((n_in, n_hidden), lambda i: (0, 0)),
                pl.BlockSpec((1, n_hidden), lambda i: (0, 0)),
                pl.BlockSpec((n_hidden, n_out), lambda i: (0, 0)),
                pl.BlockSpec((1, n_out), lambda i: (0, 0)),
            ],
            # Unpadded output: last dim == full array dim, so this is legal and
            # writes only the real n_out columns (masked vst beats 8x traffic).
            out_specs=pl.BlockSpec((tm, n_out), lambda i: (i, 0)),
        ),
        compiler_params=pltpu.CompilerParams(
            # Independent batch tiles -> megacore-shardable on v7x.
            dimension_semantics=("parallel",),
            vmem_limit_bytes=_vmem_limit_bytes(tm, n_in, n_hidden, n_out,
                                               x.dtype, w1.dtype, out_dtype),
        ),
    )(x, w1, b1, w2, b2)

    return out


def init_params(key, n_in, n_hidden, n_out, dtype=jnp.float32):
    """Deterministic init mimicking nn.Linear's U(-1/sqrt(fan_in), 1/sqrt(fan_in))."""
    k1, k2, k3, k4 = jax.random.split(key, 4)
    bound1 = 1.0 / (n_in ** 0.5)
    bound2 = 1.0 / (n_hidden ** 0.5)
    # Stored transposed relative to PyTorch (out_features, in_features) layout.
    w1 = jax.random.uniform(k1, (n_in, n_hidden), dtype, -bound1, bound1)
    b1 = jax.random.uniform(k2, (1, n_hidden), dtype, -bound1, bound1)
    w2 = jax.random.uniform(k3, (n_hidden, n_out), dtype, -bound2, bound2)
    b2 = jax.random.uniform(k4, (1, n_out), dtype, -bound2, bound2)
    return w1, b1, w2, b2


if __name__ == "__main__":
    # Small shapes consistent with the module: batch=8, n_in=32, n_hidden=64, n_out=16.
    B, n_in, n_hidden, n_out = 8, 32, 64, 16

    key = jax.random.PRNGKey(0)
    kx, kp = jax.random.split(key)
    x = jax.random.normal(kx, (B, n_in), dtype=jnp.float32)
    w1, b1, w2, b2 = init_params(kp, n_in, n_hidden, n_out)

    ref = jnp.maximum(x @ w1 + b1, 0.0) @ w2 + b2

    # 1) f32 compute path — tight tolerance.
    p_f32 = prepare_params(w1, b1, w2, b2)
    out = jax.block_until_ready(logistic_regression_forward(x, *p_f32))
    assert out.shape == (B, n_out)
    assert jnp.allclose(out, ref, atol=1e-5, rtol=1e-5), "f32 mismatch vs reference"

    # 2) bf16 weight path (recommended on v6e/v7x): weights pre-cast once,
    #    X cast to bf16 inside the kernel — looser tolerance.
    p_bf16 = prepare_params(w1, b1, w2, b2, compute_dtype=jnp.bfloat16)
    out_bf16 = jax.block_until_ready(logistic_regression_forward(x, *p_bf16))
    assert out_bf16.shape == (B, n_out)
    assert jnp.allclose(out_bf16, ref, atol=5e-2, rtol=5e-2), "bf16 mismatch vs reference"

    # 3) Multi-tile batch, default block_m: exercises the v7x megacore split
    #    (tm=152, grid=2, ragged last tile) without any wrapper-side padding.
    B2 = 300
    x2 = jax.random.normal(jax.random.PRNGKey(1), (B2, n_in), dtype=jnp.float32)
    ref2 = jnp.maximum(x2 @ w1 + b1, 0.0) @ w2 + b2
    out2 = jax.block_until_ready(logistic_regression_forward(x2, *p_f32))
    assert out2.shape == (B2, n_out)
    assert jnp.allclose(out2, ref2, atol=1e-5, rtol=1e-5), "split-tile mismatch vs reference"

    # 4) Explicit small tile: grid=3 with a 44-row ragged last tile.
    out3 = jax.block_until_ready(
        logistic_regression_forward(x2, *p_f32, block_m=128))
    assert out3.shape == (B2, n_out)
    assert jnp.allclose(out3, ref2, atol=1e-5, rtol=1e-5), "ragged-tile mismatch vs reference"

    print("KERNEL_OK")
</pallas_src>

<mosaic_0001>
module attributes {stable_mosaic.version = 11 : i64} {
  func.func @_mlp_kernel(%arg0: i32, %arg1: memref<8x32xf32, #tpu.memory_space<vmem>>, %arg2: memref<32x64xf32, #tpu.memory_space<vmem>>, %arg3: memref<1x64xf32, #tpu.memory_space<vmem>>, %arg4: memref<64x16xf32, #tpu.memory_space<vmem>>, %arg5: memref<1x16xf32, #tpu.memory_space<vmem>>, %arg6: memref<8x16xf32, #tpu.memory_space<vmem>>) attributes {dimension_semantics = [#tpu.dimension_semantics<parallel>], iteration_bounds = array<i64: 1>, scalar_prefetch = 0 : i64, scratch_operands = 0 : i64, tpu.core_type = #tpu.core_type<tc>, window_params = [{transform_indices = @transform_0, window_bounds = array<i64: 8, 32>}, {pipeline_mode = #tpu.pipeline_mode<synchronous>, transform_indices = @transform_1, window_bounds = array<i64: 32, 64>}, {pipeline_mode = #tpu.pipeline_mode<synchronous>, transform_indices = @transform_2, window_bounds = array<i64: 1, 64>}, {pipeline_mode = #tpu.pipeline_mode<synchronous>, transform_indices = @transform_3, window_bounds = array<i64: 64, 16>}, {pipeline_mode = #tpu.pipeline_mode<synchronous>, transform_indices = @transform_4, window_bounds = array<i64: 1, 16>}, {transform_indices = @transform_5, window_bounds = array<i64: 8, 16>}]} {
    %c0 = arith.constant 0 : index
    %c0_0 = arith.constant 0 : index
    %0 = vector.load %arg1[%c0, %c0_0] : memref<8x32xf32, #tpu.memory_space<vmem>>, vector<8x32xf32>
    %c0_1 = arith.constant 0 : index
    %c0_2 = arith.constant 0 : index
    %1 = vector.load %arg2[%c0_1, %c0_2] : memref<32x64xf32, #tpu.memory_space<vmem>>, vector<32x64xf32>
    %cst = arith.constant dense<0.000000e+00> : vector<8x64xf32>
    %2 = tpu.matmul %0, %1, %cst {dimension_numbers = #tpu.dot_dimension_numbers<[1], [0], [0], [1], [0, 0, 1, 1], [], []>} : vector<8x32xf32>, vector<32x64xf32>, vector<8x64xf32> -> vector<8x64xf32>
    %c0_3 = arith.constant 0 : index
    %c0_4 = arith.constant 0 : index
    %3 = vector.load %arg3[%c0_3, %c0_4] : memref<1x64xf32, #tpu.memory_space<vmem>>, vector<1x64xf32>
    %4 = vector.broadcast %3 : vector<1x64xf32> to vector<8x64xf32>
    %5 = arith.addf %2, %4 : vector<8x64xf32>
    %cst_5 = arith.constant 0.000000e+00 : f32
    %6 = vector.broadcast %cst_5 : f32 to vector<8x64xf32>
    %7 = arith.maximumf %5, %6 : vector<8x64xf32>
    %c0_6 = arith.constant 0 : index
    %c0_7 = arith.constant 0 : index
    %8 = vector.load %arg4[%c0_6, %c0_7] : memref<64x16xf32, #tpu.memory_space<vmem>>, vector<64x16xf32>
    %cst_8 = arith.constant dense<0.000000e+00> : vector<8x16xf32>
    %9 = tpu.matmul %7, %8, %cst_8 {dimension_numbers = #tpu.dot_dimension_numbers<[1], [0], [0], [1], [0, 0, 1, 1], [], []>} : vector<8x64xf32>, vector<64x16xf32>, vector<8x16xf32> -> vector<8x16xf32>
    %c0_9 = arith.constant 0 : index
    %c0_10 = arith.constant 0 : index
    %10 = vector.load %arg5[%c0_9, %c0_10] : memref<1x16xf32, #tpu.memory_space<vmem>>, vector<1x16xf32>
    %11 = vector.broadcast %10 : vector<1x16xf32> to vector<8x16xf32>
    %12 = arith.addf %9, %11 : vector<8x16xf32>
    %c0_11 = arith.constant 0 : index
    %c0_12 = arith.constant 0 : index
    %13 = vector.load %arg6[%c0_11, %c0_12] : memref<8x16xf32, #tpu.memory_space<vmem>>, vector<8x16xf32>
    tpu.vector_store %arg6[%c0_11, %c0_12], %12 {strides = array<i32>} : memref<8x16xf32, #tpu.memory_space<vmem>>, vector<8x16xf32>,
    return
  }
  func.func @transform_0(%arg0: i32) -> (i32, i32) {
    %c0_i32 = arith.constant 0 : i32
    %c0_i32_0 = arith.constant 0 : i32
    return %arg0, %c0_i32 : i32, i32
  }
  func.func @transform_1(%arg0: i32) -> (i32, i32) {
    %c0_i32 = arith.constant 0 : i32
    %c0_i32_0 = arith.constant 0 : i32
    %c0_i32_1 = arith.constant 0 : i32
    return %c0_i32, %c0_i32_0 : i32, i32
  }
  func.func @transform_2(%arg0: i32) -> (i32, i32) {
    %c0_i32 = arith.constant 0 : i32
    %c0_i32_0 = arith.constant 0 : i32
    %c0_i32_1 = arith.constant 0 : i32
    return %c0_i32, %c0_i32_0 : i32, i32
  }
  func.func @transform_3(%arg0: i32) -> (i32, i32) {
    %c0_i32 = arith.constant 0 : i32
    %c0_i32_0 = arith.constant 0 : i32
    %c0_i32_1 = arith.constant 0 : i32
    return %c0_i32, %c0_i32_0 : i32, i32
  }
  func.func @transform_4(%arg0: i32) -> (i32, i32) {
    %c0_i32 = arith.constant 0 : i32
    %c0_i32_0 = arith.constant 0 : i32
    %c0_i32_1 = arith.constant 0 : i32
    return %c0_i32, %c0_i32_0 : i32, i32
  }
  func.func @transform_5(%arg0: i32) -> (i32, i32) {
    %c0_i32 = arith.constant 0 : i32
    %c0_i32_0 = arith.constant 0 : i32
    return %arg0, %c0_i32 : i32, i32
  }
}

</mosaic_0001>

<bundles_post_ra>
// kernel: logistic_regression_forward.1
= control target key start
LH: loop header
LB: loop body
LE: loop exit
PB: predicated region body
PF: predicated region fallthrough
CT: control target
= control target key end

     0   :  { %v286_v1 = vmov 0.0   ;;  %vm287_vm0 = vmmov 0   ;;  %s369_s0 = inlined_call_operand.vmem [shape: f32[8,32], index: 0, kind: input, shape index: {}]   ;;  %s370_s1 = inlined_call_operand.vmem [shape: f32[32,64], index: 1, kind: input, shape index: {}]   ;;  %s371_s2 = inlined_call_operand.vmem [shape: f32[1,64], index: 2, kind: input, shape index: {}]   ;;  %s372_s3 = inlined_call_operand.vmem [shape: f32[64,16], index: 3, kind: input, shape index: {}]   ;;  %s373_s4 = inlined_call_operand.vmem [shape: f32[1,16], index: 4, kind: input, shape index: {}]   ;;  %s374_s5 = inlined_call_operand.hbm [shape: f32[8,16], index: 5, kind: output, shape index: {}]  }
   0x1   :  { %v25_v0 = vld [vmem:[%s370_s1 + $0x18] sm:$0xff]  ;;  %231 = vmatprep.subr.mxu0 %v286_v1  ;;  %v24_v2 = vld [vmem:[%s370_s1 + $0x10] sm:$0xff]  ;;  %239 = vmatprep.mubr.msk.f32.mxu0 %vm287_vm0, %v286_v1  ;;  %v23_v5 = vld [vmem:[%s370_s1 + $0x8] sm:$0xff] }
   0x2   :  { %v115_v3 = vld [vmem:[%s372_s3 + $0x38] sm:$0xff]  ;;  %232 = vmatpush3.msra.mxu0 %v25_v0  ;;  %242 = vmatprep.subr.mxu1 %v286_v1  ;;  %v114_v4 = vld [vmem:[%s372_s3 + $0x30] sm:$0xff] }
   0x3   :  { %233 = vmatprep.subr.mxu0 %v286_v1  ;;  %243 = vmatpush3.msra.mxu1 %v115_v3 }
   0x4   :  { %10 = vsyncpa [#allocation3], 0  ;;  %234 = vmatpush3.msra.mxu0 %v24_v2  ;;  %244 = vmatprep.subr.mxu1 %v286_v1  ;;  %v113_v6 = vld [vmem:[%s372_s3 + $0x28] sm:$0xff]  ;;  %v22_v7 = vld [vmem:[%s370_s1] sm:$0xff]  ;;  %vm33_vm1 = vcmask 261120   ;;  %vm123_vm2 = vcmask 523264  }
   0x5   :  { %235 = vmatprep.subr.mxu0 %v286_v1  ;;  %245 = vmatpush3.msra.mxu1 %v114_v4  ;;  %v21_v8 = vld [vmem:[%s369_s0] sm:$0xff]  ;;  %v111_v10 = vld [vmem:[%s372_s3 + $0x18] sm:$0xff]  ;;  %v110_v11 = vld [vmem:[%s372_s3 + $0x10] sm:$0xff]  ;;  %s288_s21 = smov [#allocation2]   ;;  %vm197_vm3 = vcmask 130048  }
   0x6   :  { %236 = vmatpush3.msra.mxu0 %v23_v5  ;;  %246 = vmatprep.subr.mxu1 %v286_v1  ;;  %v112_v9 = vld [vmem:[%s372_s3 + $0x20] sm:$0xff]  ;;  %v109_v12 = vld [vmem:[%s372_s3 + $0x8] sm:$0xff]  ;;  %s205_s22 = sshll.u32 %s288_s21, 4  ;;  %s206_s22 = int_to_ptr.vmem [resolvable:$true] %s205_s22 }
   0x7   :  { %237 = vmatprep.subr.mxu0 %v286_v1  ;;  %247 = vmatpush3.msra.mxu1 %v113_v6  ;;  %v108_v13 = vld [vmem:[%s372_s3] sm:$0xff]  ;;  %s264_s3 = scalar_lea.vmem %s206_s22, 128  ;;  %p269_p1 = scmp.lt.s32.totalorder %s206_s22, %s206_s22 }
   0x8   :  { %238 = vmatpush3.msra.mxu0 %v22_v7  ;;  %248 = vmatprep.subr.mxu1 %v286_v1  ;;  %v213_v14 = vld [vmem:[%s371_s2] ss:$0 sm:$0xff]  ;;  %p265_p0 = scmp.ne.s32.totalorder %s206_s22, %s264_s3  ;;  %p270_p2 = scmp.lt.s32.totalorder %s264_s3, %s264_s3 }
   0x9   :  { %240 = vmatmul.mubr.msk.f32.vlgmr.msra.gmra.mxu0 %vm33_vm1, %v21_v8  ;;  %249 = vmatpush3.msra.mxu1 %v112_v9  ;;  %v215_v19 = vld [vmem:[%s373_s4] ss:$0 sm:$0xff] }
   0xa   :  { %250 = vmatprep.subr.mxu1 %v286_v1  ;;  %258 = vmatprep.mubr.msk.f32.mxu1 %vm287_vm0, %v286_v1  ;;  %p271_p3 = por %p270_p2, %p269_p1 }
   0xb   :  { %251 = vmatpush3.msra.mxu1 %v111_v10 }
   0xc   :  { %252 = vmatprep.subr.mxu1 %v286_v1  ;;  %p272_p4 = pnand %p271_p3, %p265_p0 }
   0xd   :  { %253 = vmatpush3.msra.mxu1 %v110_v11 }
   0xe   :  { %254 = vmatprep.subr.mxu1 %v286_v1 }
   0xf   :  { %255 = vmatpush3.msra.mxu1 %v109_v12 }
  0x10   :  { %256 = vmatprep.subr.mxu1 %v286_v1 }
  0x11   :  { %257 = vmatpush3.msra.mxu1 %v108_v13 }
  0xc9   :  { %v103_v15 = vpop.f32.mrf.mxu0 }
  0xca   :  { %v104_v16 = vadd.f32 %v213_v14, %v103_v15 }
  0xcb   :  { %v241_v17 = vpop.f32.mrf.mxu0 }
  0xcc   :  { %v107_v18 = vmax.f32 %v104_v16, 0.0 }
  0xce   :  { %259 = vmatmul.mubr.msk.f32.vlgmr.msra.gmra.mxu1 %vm123_vm2, %v107_v18 }
 0x18e   :  { %v193_v20 = vpop.f32.mrf.mxu1 }
 0x18f   :  { %v194_v21 = vadd.f32 %v215_v19, %v193_v20 }
 0x190   :  { %v260_v22 = vpop.f32.mrf.mxu1 }
 0x191   :  { %198 = vst.msk [vmem:[#allocation2] sm:$0xff] %vm197_vm3, %v194_v21 }
 0x192   :  { %275 = shalt.err (!%p272_p4)
}
 0x193   :  { %208 = dma.vmem_to_hbm [thread:$0]  %s206_s22, 128, %s374_s5, [#allocation3]  }
 0x194   :  { %284 = dma.done.wait [#allocation3], 128  }
 0x195   :  { %285 = vsyncadd [#allocation3], 4294967168 }
 0x196   :  { %212 = vsyncpa [#allocation3], 1 }

</bundles_post_ra>
